<compile_context>
chip_gen: v5e
topology: v5e:2x2
jax: 0.10.0
libtpu: 0.0.40
codegen_flags: <defaults>
</compile_context>

<pallas_src>
import jax
import jax.numpy as jnp
from jax.experimental import pallas as pl
from jax.experimental.pallas import tpu as pltpu


def _round_up(n, m):
    return ((n + m - 1) // m) * m


def _cmf_kernel(x_ref, o_ref):
    """One (TB, Cp) batch tile: y = x @ T, T[i, j] = 1 if i <= j.

    The triangular ones matrix is built in-register from two iotas, so no
    weight is ever read from HBM or held in (double-buffered) VMEM.
    """
    cp = x_ref.shape[-1]
    row = jax.lax.broadcasted_iota(jnp.int32, (cp, cp), 0)
    col = jax.lax.broadcasted_iota(jnp.int32, (cp, cp), 1)
    tri = (row <= col).astype(jnp.float32)          # W^T: upper-triangular ones
    acc = jnp.dot(x_ref[...].astype(jnp.float32), tri,
                  preferred_element_type=jnp.float32)
    o_ref[...] = acc.astype(o_ref.dtype)


def cmf_forward(x, *, block_b=None):
    """CMF forward (cumsum along the last axis) via a Pallas TPU kernel.

    Accepts x of shape (..., num_classes); returns the same shape/dtype.
    """
    orig_shape = x.shape
    orig_dtype = x.dtype
    C = orig_shape[-1]
    x2 = x.reshape(-1, C)
    B = x2.shape[0]

    # Lane-dense class axis: pad up to a multiple of 128 (zeros don't affect
    # the prefix sums of the first C columns; padded rows/cols are sliced off).
    Cp = _round_up(max(C, 128), 128)

    # Batch tile: multiple of 8 (f32 sublane). Sized so 2 (in+out) * 2
    # (double-buffer) * TB * Cp * 4B plus the in-kernel Cp*Cp*4B mask fits
    # comfortably in the smallest scoped-VMEM budget (v7x).
    # TODO(synk): for very large num_classes, additionally block over the
    # class axis (triangular grid + running block-offset accumulator).
    if block_b is None:
        budget = 4 * 1024 * 1024                     # bytes for one x block
        block_b = max(8, min(1024, (budget // (Cp * 4)) // 8 * 8))
    TB = min(block_b, _round_up(B, 8))
    TB = max(8, (TB // 8) * 8)
    Bp = _round_up(B, TB)

    xp = jnp.zeros((Bp, Cp), jnp.float32).at[:B, :C].set(x2.astype(jnp.float32))

    out = pl.pallas_call(
        _cmf_kernel,
        out_shape=jax.ShapeDtypeStruct((Bp, Cp), jnp.float32),
        grid=(Bp // TB,),
        in_specs=[pl.BlockSpec((TB, Cp), lambda i: (i, 0))],
        out_specs=pl.BlockSpec((TB, Cp), lambda i: (i, 0)),
        compiler_params=pltpu.CompilerParams(
            dimension_semantics=("parallel",),
        ),
    )(xp)

    return out[:B, :C].astype(orig_dtype).reshape(orig_shape)


if __name__ == "__main__":
    num_classes = 32
    batch = 20                       # deliberately not a multiple of 8/TB

    key = jax.random.PRNGKey(0)
    logits = jax.random.normal(key, (batch, num_classes), dtype=jnp.float32)
    x = jax.nn.softmax(logits, axis=-1)        # a genuine PMF per row

    # Small batch tile to exercise the multi-step parallel grid + padding path.
    y = cmf_forward(x, block_b=8)
    y = jax.block_until_ready(y)

    # Reference: y[..., k] = sum_{j<=k} x[..., j]  (cumulative sum)
    y_ref = jnp.cumsum(x, axis=-1)
    assert y.shape == x.shape and y.dtype == x.dtype
    assert jnp.allclose(y, y_ref, atol=1e-5, rtol=1e-5), "mismatch vs reference"

    print("KERNEL_OK")
</pallas_src>

<mosaic_0001>
module attributes {stable_mosaic.version = 11 : i64} {
  func.func @_cmf_kernel(%arg0: i32, %arg1: memref<8x128xf32, #tpu.memory_space<vmem>>, %arg2: memref<8x128xf32, #tpu.memory_space<vmem>>) attributes {dimension_semantics = [#tpu.dimension_semantics<parallel>], iteration_bounds = array<i64: 3>, scalar_prefetch = 0 : i64, scratch_operands = 0 : i64, tpu.core_type = #tpu.core_type<tc>, window_params = [{transform_indices = @transform_0, window_bounds = array<i64: 8, 128>}, {transform_indices = @transform_1, window_bounds = array<i64: 8, 128>}]} {
    %0 = tpu.iota {dimensions = array<i32: 0>} : vector<128x128xi32>
    %1 = tpu.iota {dimensions = array<i32: 1>} : vector<128x128xi32>
    %2 = arith.cmpi sle, %0, %1 : vector<128x128xi32>
    %3 = arith.extui %2 : vector<128x128xi1> to vector<128x128xi32>
    %4 = arith.sitofp %3 : vector<128x128xi32> to vector<128x128xf32>
    %c0 = arith.constant 0 : index
    %c0_0 = arith.constant 0 : index
    %5 = vector.load %arg1[%c0, %c0_0] : memref<8x128xf32, #tpu.memory_space<vmem>>, vector<8x128xf32>
    %cst = arith.constant dense<0.000000e+00> : vector<8x128xf32>
    %6 = tpu.matmul %5, %4, %cst {dimension_numbers = #tpu.dot_dimension_numbers<[1], [0], [0], [1], [0, 0, 1, 1], [], []>} : vector<8x128xf32>, vector<128x128xf32>, vector<8x128xf32> -> vector<8x128xf32>
    %c0_1 = arith.constant 0 : index
    %c0_2 = arith.constant 0 : index
    %7 = vector.load %arg2[%c0_1, %c0_2] : memref<8x128xf32, #tpu.memory_space<vmem>>, vector<8x128xf32>
    tpu.vector_store %arg2[%c0_1, %c0_2], %6 {strides = array<i32>} : memref<8x128xf32, #tpu.memory_space<vmem>>, vector<8x128xf32>,
    return
  }
  func.func @transform_0(%arg0: i32) -> (i32, i32) {
    %c0_i32 = arith.constant 0 : i32
    %c0_i32_0 = arith.constant 0 : i32
    return %arg0, %c0_i32 : i32, i32
  }
  func.func @transform_1(%arg0: i32) -> (i32, i32) {
    %c0_i32 = arith.constant 0 : i32
    %c0_i32_0 = arith.constant 0 : i32
    return %arg0, %c0_i32 : i32, i32
  }
}

</mosaic_0001>

<bundles_post_ra>
// kernel: tpu_custom_call.1
= control target key start
LH: loop header
LB: loop body
LE: loop exit
PB: predicated region body
PF: predicated region fallthrough
CT: control target
= control target key end

     0   :  { %6 = vsyncpa [#allocation3], 0  ;;  %s641_s0 = inlined_call_operand.hbm [shape: f32[24,128], index: 0, kind: input, shape index: {}]   ;;  %s642_s1 = inlined_call_operand.hbm [shape: f32[24,128], index: 1, kind: output, shape index: {}]  }
   0x1   :  { %8 = vsyncpa [#allocation3 + $0x1], 0 }
   0x2   :  { %9 = vsyncpa [#allocation4], 0 }
   0x3   :  { %11 = vsyncpa [#allocation4 + $0x1], 0  ;;  %s509_s6 = smov 0   ;;  %s511_s7 = smov 0  }
   0x4   :  { %s513_s8 = smov 0   ;;  %s515_s9 = smov 0  }
   0x5 LB: > { %s530_s10 = sadd.s32 4294967295, %s496_s9   ;;  %s309_s11 = sadd.s32 4294967294, %s496_s9   ;;  %s496_s9 = sphi %s515_s9, %s651_s9   ;;  %s492_s8 = sphi %s513_s8, %s650_s8   ;;  %s488_s7 = sphi %s511_s7, %s649_s7   ;;  %s484_s6 = sphi %s509_s6, %s648_s6  }
   0x6   : > { %s534_s12 = sadd.s32 1, %s496_s9   ;;  %s24_s13 = sadd.s32 1, %s492_s8 }
   0x7   : > { %s21_s14 = ssub.s32 %s496_s9, %s534_s12  ;;  %p31_p0 = scmp.ne.s32.totalorder %s492_s8, %s488_s7 }
   0x8   : > { %p22_p1 = scmp.eq.s32.totalorder %s21_s14, 0  ;;  %p32_p2 = scmp.eq.s32.totalorder %s496_s9, 0 }
   0x9   : > { %p37_p3 = scmp.ne.s32.totalorder %s488_s7, %s484_s6  ;;  %p38_p4 = scmp.eq.s32.totalorder %s530_s10, 0 }
   0xa   : > { %s546_s15 = scalar_select %p22_p1, %s492_s8, %s24_s13  }
   0xb   : > { %p548_p5 = por %p32_p2, %p31_p0  ;;  %p552_p6 = por %p38_p4, %p37_p3 }
   0xc   : > { %p61_p7 = scmp.eq.s32.totalorder %s530_s10, 2  ;;  %p67_p8 = scmp.eq.s32.totalorder %s309_s11, 2 }
   0xd   : > { %p365_p9 = scmp.lt.s32.totalorder %s496_s9, 3  ;;  %s87_s20 = sand.u32 1, %s492_s8  }
   0xe   : > { %p558_p10 = por %p61_p7, %p31_p0  ;;  %p562_p11 = por %p67_p8, %p37_p3 }
   0xf   : > { %s313_s21 = sshll.u32 %s496_s9, 3  ;;  %s312_s22 = sshll.u32 %s87_s20, 3 }
  0x10   : > { %s95_s25 = scalar_lea.hbm %s641_s0, %s313_s21  ;;  %s91_s27 = scalar_lea.vmem [#allocation2], %s312_s22 }
  0x11   : > { %s97_s26 = sshll.u32 %s95_s25, 4  ;;  %s99_s28 = sshll.u32 %s91_s27, 4  ;;  %s98_s26 = int_to_ptr.hbm [resolvable:$true] %s97_s26  ;;  %s100_s28 = int_to_ptr.vmem [resolvable:$true] %s99_s28 }
  0x12   : > { %p573_p12 = pnand %p365_p9, %p548_p5  ;;  %p314_p13 = scmp.ge.s32.totalorder %s496_s9, 1 }
  0x13   : > { %p104_p0 = scmp.lt.s32.totalorder %s496_s9, 4  ;;  %s88_s30 = scalar_lea.sflag [#allocation3], %s87_s20 }
  0x14   : > { %s400_s2 = sshra.s32 %s98_s26, 4  ;;  %p404_p2 = pneg %p573_p12  ;;  %s401_s2 = int_to_ptr.hbm [resolvable:$true] %s400_s2 }
  0x15   : > { %s402_s3 = scalar_lea.hbm %s401_s2, 8  ;;  %s407_s11 = scalar_lea.hbm %s641_s0, 24 }
  0x16   : > { %p403_p1 = scmp.ne.s32.totalorder %s401_s2, %s402_s3  ;;  %p408_p5 = scmp.lt.s32.totalorder %s401_s2, %s641_s0 }
  0x17   : > { %p409_p7 = scmp.lt.s32.totalorder %s407_s11, %s402_s3 }
  0x18   : > { %p405_p3 = pnand %p404_p2, %p403_p1 }
  0x19   : > { %p410_p8 = por %p409_p7, %p408_p5 }
  0x1a   : > { %p406_p4 = pneg %p405_p3 }
  0x1c   : > { %p411_p9 = pnand %p410_p8, %p406_p4 }
  0x1e   : > { %414 = shalt.err (!%p411_p9)
}
  0x1f   : > { %360 = dma.hbm_to_vmem [thread:$0]  (!%p573_p12), %s98_s26, 128, %s100_s28, %s88_s30  }
  0x20   : > { %p105_p1 = pnand %p314_p13, %p104_p0 }
  0x21   : > { %s594_s16 = sand.u32 (!%p105_p1), 1, %s488_s7  }
  0x22   : > { %108 = sbr.rel (%p105_p1) target bundleno = 206 (0xce), region = 24  ;;  %s315_s20 = sshll.u32 (!%p105_p1), %s594_s16, 3 }
  0x23   : > { %s111_s21 = scalar_lea.sflag (!%p105_p1), [#allocation3], %s594_s16  ;;  %s600_s22 = scalar_lea.vmem (!%p105_p1), [#allocation2], %s315_s20 }
  0x27   : > { %v134_v0 = vlaneseq }
  0x28   : > { %475 = dma.done.wait (%p552_p6), %s111_s21, 128  }
  0x29   : > { %477 = vsyncadd (%p552_p6), %s111_s21, 4294967168  ;;  %v135_v1 = vshrl.u32 %v134_v0, 7  ;;  %v152_v2 = vand.u32 127, %v134_v0  ;;  %v498_v7 = vmov 1.0   ;;  %v201_v19 = vld [vmem:[%s600_s22] sm:$0xff]  ;;  %s350_s17 = sshll.u32 %s530_s10, 3 }
  0x2a   : > { %s234_s25 = scalar_lea.hbm %s642_s1, %s350_s17  ;;  %s133_s26 = scalar_lea.vmem [#allocation5], %s315_s20 }
  0x2b   : > { %v150_v3 = vadd.s32 120, %v135_v1  ;;  %v149_v4 = vadd.s32 112, %v135_v1  ;;  %v148_v5 = vadd.s32 104, %v135_v1  ;;  %v147_v6 = vadd.s32 96, %v135_v1  ;;  %s236_s27 = sshll.u32 %s133_s26, 4  ;;  %s238_s28 = sshll.u32 %s234_s25, 4  ;;  %s237_s27 = int_to_ptr.vmem [resolvable:$true] %s236_s27  ;;  %s239_s28 = int_to_ptr.hbm [resolvable:$true] %s238_s28 }
  0x2c   : > { %v146_v8 = vadd.s32 88, %v135_v1  ;;  %v145_v9 = vadd.s32 80, %v135_v1  ;;  %v144_v10 = vadd.s32 72, %v135_v1  ;;  %v143_v11 = vadd.s32 64, %v135_v1  ;;  %s224_s29 = scalar_lea.sflag [#allocation4], %s594_s16  ;;  %s444_s30 = sshra.s32 %s239_s28, 4  ;;  %s445_s30 = int_to_ptr.hbm [resolvable:$true] %s444_s30 }
  0x2d   : > { %vm168_vm0 = vcmp.le.s32.totalorder %v150_v3, %v152_v2  ;;  %vm167_vm1 = vcmp.le.s32.totalorder %v149_v4, %v152_v2  ;;  %vm166_vm2 = vcmp.le.s32.totalorder %v148_v5, %v152_v2  ;;  %vm165_vm3 = vcmp.le.s32.totalorder %v147_v6, %v152_v2  ;;  %s446_s2 = scalar_lea.hbm %s445_s30, 8  ;;  %s450_s4 = scalar_lea.hbm %s642_s1, 24 }
  0x2e   : > { %333 = vmatpush.msk.msra.mxu0 %vm168_vm0, %v498_v7  ;;  %vm164_vm4 = vcmp.le.s32.totalorder %v146_v8, %v152_v2  ;;  %vm163_vm5 = vcmp.le.s32.totalorder %v145_v9, %v152_v2  ;;  %vm162_vm6 = vcmp.le.s32.totalorder %v144_v10, %v152_v2  ;;  %v142_v12 = vadd.s32 56, %v135_v1  ;;  %p447_p6 = scmp.ne.s32.totalorder %s445_s30, %s446_s2  ;;  %p451_p0 = scmp.lt.s32.totalorder %s445_s30, %s642_s1 }
  0x2f   : > { %vm161_vm7 = vcmp.le.s32.totalorder %v143_v11, %v152_v2  ;;  %v141_v13 = vadd.s32 48, %v135_v1  ;;  %v140_v14 = vadd.s32 40, %v135_v1  ;;  %v139_v15 = vadd.s32 32, %v135_v1  ;;  %p452_p2 = scmp.lt.s32.totalorder %s450_s4, %s446_s2 }
  0x30   : > { %334 = vmatpush.msk.msra.mxu0 %vm167_vm1, %v498_v7  ;;  %vm160_vm8 = vcmp.le.s32.totalorder %v142_v12, %v152_v2  ;;  %v138_v16 = vadd.s32 24, %v135_v1  ;;  %v137_v17 = vadd.s32 16, %v135_v1  ;;  %v136_v18 = vadd.s32 8, %v135_v1  ;;  %p448_p12 = pnand %p447_p6, %p558_p10 }
  0x31   : > { %vm159_vm9 = vcmp.le.s32.totalorder %v141_v13, %v152_v2  ;;  %vm158_vm10 = vcmp.le.s32.totalorder %v140_v14, %v152_v2  ;;  %vm157_vm11 = vcmp.le.s32.totalorder %v139_v15, %v152_v2  ;;  %vm153_vm15 = vcmp.le.s32.totalorder %v135_v1, %v152_v2  ;;  %p453_p3 = por %p452_p2, %p451_p0 }
  0x32   : > { %335 = vmatpush.msk.msra.mxu0 %vm166_vm2, %v498_v7  ;;  %vm156_vm12 = vcmp.le.s32.totalorder %v138_v16, %v152_v2  ;;  %vm155_vm13 = vcmp.le.s32.totalorder %v137_v17, %v152_v2  ;;  %vm154_vm14 = vcmp.le.s32.totalorder %v136_v18, %v152_v2  ;;  %p449_p13 = pneg %p448_p12 }
  0x34   : > { %336 = vmatpush.msk.msra.mxu0 %vm165_vm3, %v498_v7  ;;  %p454_p4 = pnand %p453_p3, %p449_p13 }
  0x36   : > { %337 = vmatpush.msk.msra.mxu0 %vm164_vm4, %v498_v7 }
  0x38   : > { %338 = vmatpush.msk.msra.mxu0 %vm163_vm5, %v498_v7 }
  0x3a   : > { %339 = vmatpush.msk.msra.mxu0 %vm162_vm6, %v498_v7 }
  0x3c   : > { %340 = vmatpush.msk.msra.mxu0 %vm161_vm7, %v498_v7 }
  0x3e   : > { %341 = vmatpush.msk.msra.mxu0 %vm160_vm8, %v498_v7 }
  0x40   : > { %342 = vmatpush.msk.msra.mxu0 %vm159_vm9, %v498_v7 }
  0x42   : > { %343 = vmatpush.msk.msra.mxu0 %vm158_vm10, %v498_v7 }
  0x44   : > { %344 = vmatpush.msk.msra.mxu0 %vm157_vm11, %v498_v7 }
  0x46   : > { %345 = vmatpush.msk.msra.mxu0 %vm156_vm12, %v498_v7 }
  0x48   : > { %346 = vmatpush.msk.msra.mxu0 %vm155_vm13, %v498_v7 }
  0x4a   : > { %347 = vmatpush.msk.msra.mxu0 %vm154_vm14, %v498_v7 }
  0x4c   : > { %348 = vmatpush.msk.msra.mxu0 %vm153_vm15, %v498_v7 }
  0x4d   : > { %218 = vmatmul.f32.vlgmr.msra.gmra.mxu0 %v201_v19 }
  0xca   : > { %v219_v20 = vpop.f32.mrf.mxu0 }
  0xcb   : > { %222 = vst [vmem:[%s133_s26] sm:$0xff] %v219_v20 }
  0xcc   : > { %457 = shalt.err (!%p454_p4)
}
  0xcd   : > { %355 = dma.vmem_to_hbm [thread:$0]  (%p558_p10), %s237_s27, 128, %s239_s28, %s224_s29  }
  0xce PF: > { %p366_p5 = scmp.ge.s32.totalorder %s496_s9, 2  ;;  %s250_s13 = sand.u32 1, %s484_s6  }
  0xcf   : > { %s251_s14 = scalar_lea.sflag [#allocation4], %s250_s13 }
  0xd0   : > { %p362_p7 = pnand %p366_p5, %p562_p11 }
  0xd2   : > { %p363_p8 = pneg %p362_p7 }
  0xd4   : > { %479 = dma.done.wait (%p363_p8), %s251_s14, 128  }
  0xd5   : > { %481 = vsyncadd (%p363_p8), %s251_s14, 4294967168  ;;  %p14_p9 = scmp.ge.s32.totalorder %s534_s12, 5   ;;  %s648_s6 = smov %s488_s7 }
  0xd6   : > { %s649_s7 = smov %s492_s8  ;;  %s650_s8 = smov %s546_s15 }
  0xd7   : > { %s651_s9 = smov %s534_s12  ;;  %16 = sbr.rel (!%p14_p9) target bundleno = 5 (0x5), region = 69 }
  0xdc   :  { %257 = vsyncpa [#allocation3], 1 }
  0xdd   :  { %259 = vsyncpa [#allocation3 + $0x1], 1 }
  0xde   :  { %260 = vsyncpa [#allocation4], 1 }
  0xdf   :  { %262 = vsyncpa [#allocation4 + $0x1], 1 }

</bundles_post_ra>
